<compile_context>
chip_gen: v6e
topology: v6e:2x2x1
jax: 0.10.0
libtpu: 0.0.40
codegen_flags: <defaults>
</compile_context>

<pallas_src>
import functools

import jax
import jax.numpy as jnp
from jax import lax
from jax.experimental import pallas as pl
from jax.experimental.pallas import tpu as pltpu

# ----------------------------- config ---------------------------------------
NETS = 4          # net_count
X_DIM = 8
U_DIM = 4
HIDDEN = 32       # hidden_size  ->  NETS*HIDDEN = 128 packed feature width
LAYERS = 2        # number of tanh hidden layers
U_MIN = -1.0
U_MAX = 1.0
BATCH = 16

NH = NETS * HIDDEN      # 128  packed hidden width (sublane/feature axis)
NU = NETS * U_DIM       # 16   packed output width
N_HID = LAYERS - 1      # hidden->hidden layers


# ----------------------------- kernel ---------------------------------------
def _ensemble_kernel(x_ref, w_in_ref, b_in_ref, w_hid_ref, b_hid_ref,
                     w_out_ref, b_out_ref, out_ref,
                     *, nets, u_dim, n_hid, u_min, u_max, act_dtype):
    nu = nets * u_dim

    xT = x_ref[...]                                            # (X_DIM, TB)

    # Packed MLP, features in sublanes, batch in lanes: each layer is one
    # lane-dense matmul whose N dim is the batch tile (fills the MXU width).
    h = jnp.tanh(
        jnp.dot(w_in_ref[...], xT, preferred_element_type=jnp.float32)
        + b_in_ref[...])                                       # (NH, TB) f32
    for l in range(n_hid):                                     # static unroll
        h = jnp.tanh(
            jnp.dot(w_hid_ref[l], h.astype(act_dtype),
                    preferred_element_type=jnp.float32)
            + b_hid_ref[l])
    o = jnp.dot(w_out_ref[...], h.astype(act_dtype),
                preferred_element_type=jnp.float32) + b_out_ref[...]  # (NU, TB)
    o = 0.5 * (u_max - u_min) * jnp.tanh(o) + 0.5 * (u_max + u_min)

    # In-kernel compile-time reduction constants (packed row r = net*u_dim + d).
    # P[r, c] = 1/N if r%u_dim == c%u_dim : ensemble mean broadcast back to
    # every net's rows in ONE matmul (no mean -> bcast serial round trip).
    r_i = lax.broadcasted_iota(jnp.int32, (nu, nu), 0) % u_dim
    c_i = lax.broadcasted_iota(jnp.int32, (nu, nu), 1) % u_dim
    p_mat = jnp.where(r_i == c_i, 1.0 / nets, 0.0).astype(jnp.float32)

    mean_b = jnp.dot(p_mat, o, preferred_element_type=jnp.float32)   # (NU, TB)
    dev = jnp.abs(o - mean_b)          # sqrt((x)**2) == |x|, per the PyTorch spec

    # Fused [mean ; std] projection: single (8, TB) lane-dense slab, scales
    # 1/N and 1/(N-1) folded into the selector matrices, no concatenate.
    rr = lax.broadcasted_iota(jnp.int32, (2 * u_dim, nu), 0)
    cc = lax.broadcasted_iota(jnp.int32, (2 * u_dim, nu), 1) % u_dim
    r_mean = jnp.where((rr < u_dim) & (cc == rr),
                       1.0 / nets, 0.0).astype(jnp.float32)
    r_std = jnp.where((rr >= u_dim) & (cc == rr - u_dim),
                      1.0 / (nets - 1), 0.0).astype(jnp.float32)

    out_ref[...] = (jnp.dot(r_mean, o, preferred_element_type=jnp.float32)
                    + jnp.dot(r_std, dev, preferred_element_type=jnp.float32))


# ----------------------------- packing ---------------------------------------
def pack_params(params, dtype=jnp.float32):
    """Repack per-net weights into feature-major (transposed) packed form.

    dtype=jnp.bfloat16 is the recommended weight/activation dtype on v6e/v7x
    (accumulation stays f32 in the kernel); keep f32 on v5e.
    Biases stay f32 (tiny, added post-matmul in f32).
    """
    w_in, b_in, w_hid, b_hid, w_out, b_out = params
    w_in_p = jnp.concatenate([w_in[i].T for i in range(NETS)],
                             axis=0).astype(dtype)                   # (NH, X_DIM)
    b_in_p = b_in.reshape(NH, 1).astype(jnp.float32)                 # (NH, 1)
    w_hid_p = jnp.stack(
        [jax.scipy.linalg.block_diag(*[w_hid[i, l].T for i in range(NETS)])
         for l in range(N_HID)], axis=0).astype(dtype)               # (N_HID, NH, NH)
    b_hid_p = jnp.transpose(b_hid, (1, 0, 2, 3)).reshape(
        N_HID, NH, 1).astype(jnp.float32)                            # (N_HID, NH, 1)
    w_out_p = jax.scipy.linalg.block_diag(
        *[w_out[i].T for i in range(NETS)]).astype(dtype)            # (NU, NH)
    b_out_p = b_out.reshape(NU, 1).astype(jnp.float32)               # (NU, 1)
    return w_in_p, b_in_p, w_hid_p, b_hid_p, w_out_p, b_out_p


# ----------------------------- tiling ----------------------------------------
def _choose_tile(batch, cap=2048):
    """Batch tile: as big as possible (per-step overhead dominates this kernel).

    VMEM is not a constraint (~80 KiB weights + ~0.5 KiB/row), so we only cap
    at 2048; when tiling is needed the step count is kept EVEN and balanced so
    v7x's two TensorCores both get work under dimension_semantics=("parallel",).
    """
    if batch <= cap:
        return batch                       # single full-extent block is always legal
    steps = -(-batch // cap)
    if steps % 2:
        steps += 1                         # even, balanced step count (v7x megacore)
    tile = -(-batch // steps)
    return -(-tile // 128) * 128           # lane-multiple block


# ----------------------------- wrapper ---------------------------------------
def ensemble_forward(x, packed, tile_b=None, act_dtype=None):
    w_in_p, b_in_p, w_hid_p, b_hid_p, w_out_p, b_out_p = packed
    if act_dtype is None:
        act_dtype = w_in_p.dtype
    batch = x.shape[0]
    if tile_b is None:
        tile_b = _choose_tile(batch)
    grid = (pl.cdiv(batch, tile_b),)

    # Feature-major input: batch in the lane axis (lane-dense loads & stores).
    xT = x.T.astype(act_dtype)                                   # (X_DIM, batch)

    kernel = functools.partial(_ensemble_kernel, nets=NETS, u_dim=U_DIM,
                               n_hid=N_HID, u_min=U_MIN, u_max=U_MAX,
                               act_dtype=act_dtype)

    # Weights stay VMEM-resident across the batch grid (constant index maps).
    def resident(shape):
        return pl.BlockSpec(shape, lambda b: (0,) * len(shape))

    in_specs = [
        pl.BlockSpec((X_DIM, tile_b), lambda b: (0, b)),   # x streams over batch
        resident((NH, X_DIM)),
        resident((NH, 1)),
        resident((N_HID, NH, NH)),
        resident((N_HID, NH, 1)),
        resident((NU, NH)),
        resident((NU, 1)),
    ]
    # Lane-dense [mean ; std] output slab; split + transpose in the wrapper.
    out_spec = pl.BlockSpec((2 * U_DIM, tile_b), lambda b: (0, b))

    # NOTE: when batch % tile_b != 0 the last grid step computes on padded
    # (undefined) lanes; output stores are masked so results are correct — the
    # extra lanes are just wasted (harmless) compute.

    flops_per_row = 2 * (X_DIM * NH + N_HID * NH * NH + NH * NU
                         + NU * NU + 2 * (2 * U_DIM) * NU)
    trans_per_row = LAYERS * NH + NU
    bytes_in = sum(int(a.size) * a.dtype.itemsize for a in
                   (xT, w_in_p, b_in_p, w_hid_p, b_hid_p, w_out_p, b_out_p))
    bytes_out = 4 * batch * 2 * U_DIM
    cost = pl.CostEstimate(flops=batch * flops_per_row,
                           transcendentals=batch * trans_per_row,
                           bytes_accessed=bytes_in + bytes_out)

    out = pl.pallas_call(
        kernel,
        out_shape=jax.ShapeDtypeStruct((2 * U_DIM, batch), jnp.float32),
        grid=grid,
        in_specs=in_specs,
        out_specs=out_spec,
        compiler_params=pltpu.CompilerParams(
            # Shards batch steps across v7x's two TensorCores. Default scoped
            # VMEM limit is plenty here; only raise vmem_limit_bytes if tile_b
            # is ever pushed past ~16-32K rows.
            dimension_semantics=("parallel",)),
        cost_estimate=cost,
    )(xT, w_in_p, b_in_p, w_hid_p, b_hid_p, w_out_p, b_out_p)

    return out[:U_DIM].T, out[U_DIM:].T


# ------------------------- pure-JAX reference --------------------------------
def ensemble_forward_ref(x, params):
    w_in, b_in, w_hid, b_hid, w_out, b_out = params
    outs = []
    for i in range(NETS):
        h = jnp.tanh(x @ w_in[i] + b_in[i])
        for l in range(LAYERS - 1):
            h = jnp.tanh(h @ w_hid[i, l] + b_hid[i, l])
        o = h @ w_out[i] + b_out[i]
        o = 0.5 * (U_MAX - U_MIN) * jnp.tanh(o) + 0.5 * (U_MAX + U_MIN)
        outs.append(o)
    mean = sum(outs) / NETS
    # torch.sqrt((out_i - mean)**2) == |out_i - mean| (scaled mean abs deviation)
    std = sum(jnp.abs(o - mean) for o in outs) / (NETS - 1)
    return mean, std


# ----------------------------- init ------------------------------------------
def init_params(key):
    ks = jax.random.split(key, 6)
    scale = 0.1
    w_in = scale * jax.random.normal(ks[0], (NETS, X_DIM, HIDDEN), jnp.float32)
    b_in = scale * jax.random.normal(ks[1], (NETS, 1, HIDDEN), jnp.float32)
    w_hid = scale * jax.random.normal(
        ks[2], (NETS, max(LAYERS - 1, 1), HIDDEN, HIDDEN), jnp.float32)
    b_hid = scale * jax.random.normal(
        ks[3], (NETS, max(LAYERS - 1, 1), 1, HIDDEN), jnp.float32)
    w_out = scale * jax.random.normal(ks[4], (NETS, HIDDEN, U_DIM), jnp.float32)
    b_out = scale * jax.random.normal(ks[5], (NETS, 1, U_DIM), jnp.float32)
    return (w_in, b_in, w_hid, b_hid, w_out, b_out)


# TODO(synk): bootstrap()/train() (data resampling + optimizer loop) are host-side
# training utilities with no Pallas-kernel equivalent; only forward() is implemented.

if __name__ == "__main__":
    key = jax.random.PRNGKey(0)
    kx, kp = jax.random.split(key)
    x = jax.random.normal(kx, (BATCH, X_DIM), jnp.float32)
    params = init_params(kp)
    mean_ref, std_ref = ensemble_forward_ref(x, params)

    # f32 path (exact-precision check; safe default on every TPU generation).
    packed_f32 = pack_params(params, jnp.float32)
    mean, std = ensemble_forward(x, packed_f32)
    jax.block_until_ready((mean, std))
    assert jnp.allclose(mean, mean_ref, atol=2e-5, rtol=2e-5), "mean mismatch"
    assert jnp.allclose(std, std_ref, atol=2e-5, rtol=2e-5), "std mismatch"

    # bf16 weight/activation path (recommended on v6e/v7x); loose check.
    packed_bf16 = pack_params(params, jnp.bfloat16)
    mean_b, std_b = ensemble_forward(x, packed_bf16)
    jax.block_until_ready((mean_b, std_b))
    assert jnp.allclose(mean_b, mean_ref, atol=5e-2, rtol=5e-2), "bf16 mean mismatch"
    assert jnp.allclose(std_b, std_ref, atol=5e-2, rtol=5e-2), "bf16 std mismatch"

    print("KERNEL_OK")
</pallas_src>

<mosaic_0001>
module attributes {stable_mosaic.version = 11 : i64} {
  func.func @_ensemble_kernel(%arg0: i32, %arg1: memref<8x16xf32, #tpu.memory_space<vmem>>, %arg2: memref<128x8xf32, #tpu.memory_space<vmem>>, %arg3: memref<128x1xf32, #tpu.memory_space<vmem>>, %arg4: memref<1x128x128xf32, #tpu.memory_space<vmem>>, %arg5: memref<1x128x1xf32, #tpu.memory_space<vmem>>, %arg6: memref<16x128xf32, #tpu.memory_space<vmem>>, %arg7: memref<16x1xf32, #tpu.memory_space<vmem>>, %arg8: memref<8x16xf32, #tpu.memory_space<vmem>>) attributes {dimension_semantics = [#tpu.dimension_semantics<parallel>], iteration_bounds = array<i64: 1>, scalar_prefetch = 0 : i64, scratch_operands = 0 : i64, tpu.core_type = #tpu.core_type<tc>, window_params = [{transform_indices = @transform_0, window_bounds = array<i64: 8, 16>}, {pipeline_mode = #tpu.pipeline_mode<synchronous>, transform_indices = @transform_1, window_bounds = array<i64: 128, 8>}, {pipeline_mode = #tpu.pipeline_mode<synchronous>, transform_indices = @transform_2, window_bounds = array<i64: 128, 1>}, {pipeline_mode = #tpu.pipeline_mode<synchronous>, transform_indices = @transform_3, window_bounds = array<i64: 1, 128, 128>}, {pipeline_mode = #tpu.pipeline_mode<synchronous>, transform_indices = @transform_4, window_bounds = array<i64: 1, 128, 1>}, {pipeline_mode = #tpu.pipeline_mode<synchronous>, transform_indices = @transform_5, window_bounds = array<i64: 16, 128>}, {pipeline_mode = #tpu.pipeline_mode<synchronous>, transform_indices = @transform_6, window_bounds = array<i64: 16, 1>}, {transform_indices = @transform_7, window_bounds = array<i64: 8, 16>}]} {
    %c0 = arith.constant 0 : index
    %c0_0 = arith.constant 0 : index
    %0 = vector.load %arg1[%c0, %c0_0] : memref<8x16xf32, #tpu.memory_space<vmem>>, vector<8x16xf32>
    %c0_1 = arith.constant 0 : index
    %c0_2 = arith.constant 0 : index
    %1 = vector.load %arg2[%c0_1, %c0_2] : memref<128x8xf32, #tpu.memory_space<vmem>>, vector<128x8xf32>
    %cst = arith.constant dense<0.000000e+00> : vector<128x16xf32>
    %2 = tpu.matmul %1, %0, %cst {dimension_numbers = #tpu.dot_dimension_numbers<[1], [0], [0], [1], [0, 0, 1, 1], [], []>} : vector<128x8xf32>, vector<8x16xf32>, vector<128x16xf32> -> vector<128x16xf32>
    %c0_3 = arith.constant 0 : index
    %c0_4 = arith.constant 0 : index
    %3 = vector.load %arg3[%c0_3, %c0_4] : memref<128x1xf32, #tpu.memory_space<vmem>>, vector<128x1xf32>
    %4 = vector.broadcast %3 : vector<128x1xf32> to vector<128x16xf32>
    %5 = arith.addf %2, %4 : vector<128x16xf32>
    %6 = math.tanh %5 : vector<128x16xf32>
    %c0_5 = arith.constant 0 : index
    %c0_6 = arith.constant 0 : index
    %c0_7 = arith.constant 0 : index
    %7 = vector.load %arg4[%c0_5, %c0_6, %c0_7] : memref<1x128x128xf32, #tpu.memory_space<vmem>>, vector<1x128x128xf32>
    %8 = vector.shape_cast %7 : vector<1x128x128xf32> to vector<128x128xf32>
    %cst_8 = arith.constant dense<0.000000e+00> : vector<128x16xf32>
    %9 = tpu.matmul %8, %6, %cst_8 {dimension_numbers = #tpu.dot_dimension_numbers<[1], [0], [0], [1], [0, 0, 1, 1], [], []>} : vector<128x128xf32>, vector<128x16xf32>, vector<128x16xf32> -> vector<128x16xf32>
    %c0_9 = arith.constant 0 : index
    %c0_10 = arith.constant 0 : index
    %c0_11 = arith.constant 0 : index
    %10 = vector.load %arg5[%c0_9, %c0_10, %c0_11] : memref<1x128x1xf32, #tpu.memory_space<vmem>>, vector<1x128x1xf32>
    %11 = vector.shape_cast %10 : vector<1x128x1xf32> to vector<128x1xf32>
    %12 = vector.broadcast %11 : vector<128x1xf32> to vector<128x16xf32>
    %13 = arith.addf %9, %12 : vector<128x16xf32>
    %14 = math.tanh %13 : vector<128x16xf32>
    %c0_12 = arith.constant 0 : index
    %c0_13 = arith.constant 0 : index
    %15 = vector.load %arg6[%c0_12, %c0_13] : memref<16x128xf32, #tpu.memory_space<vmem>>, vector<16x128xf32>
    %cst_14 = arith.constant dense<0.000000e+00> : vector<16x16xf32>
    %16 = tpu.matmul %15, %14, %cst_14 {dimension_numbers = #tpu.dot_dimension_numbers<[1], [0], [0], [1], [0, 0, 1, 1], [], []>} : vector<16x128xf32>, vector<128x16xf32>, vector<16x16xf32> -> vector<16x16xf32>
    %c0_15 = arith.constant 0 : index
    %c0_16 = arith.constant 0 : index
    %17 = vector.load %arg7[%c0_15, %c0_16] : memref<16x1xf32, #tpu.memory_space<vmem>>, vector<16x1xf32>
    %18 = vector.broadcast %17 : vector<16x1xf32> to vector<16x16xf32>
    %19 = arith.addf %16, %18 : vector<16x16xf32>
    %20 = math.tanh %19 : vector<16x16xf32>
    %cst_17 = arith.constant 1.000000e+00 : f32
    %21 = vector.broadcast %cst_17 : f32 to vector<16x16xf32>
    %22 = arith.mulf %21, %20 : vector<16x16xf32>
    %cst_18 = arith.constant 0.000000e+00 : f32
    %23 = vector.broadcast %cst_18 : f32 to vector<16x16xf32>
    %24 = arith.addf %22, %23 : vector<16x16xf32>
    %25 = tpu.iota {dimensions = array<i32: 0>} : vector<16x16xi32>
    %c4_i32 = arith.constant 4 : i32
    %c0_i32 = arith.constant 0 : i32
    %26 = arith.cmpi eq, %c4_i32, %c0_i32 : i32
    %c1_i32 = arith.constant 1 : i32
    %27 = arith.select %26, %c1_i32, %c4_i32 : i32
    %28 = vector.broadcast %27 : i32 to vector<16x16xi32>
    %29 = arith.remsi %25, %28 : vector<16x16xi32>
    %c0_i32_19 = arith.constant 0 : i32
    %30 = vector.broadcast %c0_i32_19 : i32 to vector<16x16xi32>
    %31 = arith.cmpi ne, %29, %30 : vector<16x16xi32>
    %c0_i32_20 = arith.constant 0 : i32
    %32 = vector.broadcast %c0_i32_20 : i32 to vector<16x16xi32>
    %33 = arith.cmpi slt, %29, %32 : vector<16x16xi32>
    %c0_i32_21 = arith.constant 0 : i32
    %34 = arith.cmpi slt, %27, %c0_i32_21 : i32
    %35 = vector.broadcast %34 : i1 to vector<16x16xi1>
    %36 = vector.broadcast %35 : vector<16x16xi1> to vector<16x16xi1>
    %37 = arith.xori %33, %36 : vector<16x16xi1>
    %38 = arith.andi %37, %31 : vector<16x16xi1>
    %39 = vector.broadcast %27 : i32 to vector<16x16xi32>
    %40 = arith.addi %29, %39 : vector<16x16xi32>
    %41 = arith.select %38, %40, %29 : vector<16x16xi1>, vector<16x16xi32>
    %42 = tpu.iota {dimensions = array<i32: 1>} : vector<16x16xi32>
    %c4_i32_22 = arith.constant 4 : i32
    %c0_i32_23 = arith.constant 0 : i32
    %43 = arith.cmpi eq, %c4_i32_22, %c0_i32_23 : i32
    %c1_i32_24 = arith.constant 1 : i32
    %44 = arith.select %43, %c1_i32_24, %c4_i32_22 : i32
    %45 = vector.broadcast %44 : i32 to vector<16x16xi32>
    %46 = arith.remsi %42, %45 : vector<16x16xi32>
    %c0_i32_25 = arith.constant 0 : i32
    %47 = vector.broadcast %c0_i32_25 : i32 to vector<16x16xi32>
    %48 = arith.cmpi ne, %46, %47 : vector<16x16xi32>
    %c0_i32_26 = arith.constant 0 : i32
    %49 = vector.broadcast %c0_i32_26 : i32 to vector<16x16xi32>
    %50 = arith.cmpi slt, %46, %49 : vector<16x16xi32>
    %c0_i32_27 = arith.constant 0 : i32
    %51 = arith.cmpi slt, %44, %c0_i32_27 : i32
    %52 = vector.broadcast %51 : i1 to vector<16x16xi1>
    %53 = vector.broadcast %52 : vector<16x16xi1> to vector<16x16xi1>
    %54 = arith.xori %50, %53 : vector<16x16xi1>
    %55 = arith.andi %54, %48 : vector<16x16xi1>
    %56 = vector.broadcast %44 : i32 to vector<16x16xi32>
    %57 = arith.addi %46, %56 : vector<16x16xi32>
    %58 = arith.select %55, %57, %46 : vector<16x16xi1>, vector<16x16xi32>
    %59 = arith.cmpi eq, %41, %58 : vector<16x16xi32>
    %cst_28 = arith.constant 2.500000e-01 : f32
    %cst_29 = arith.constant 0.000000e+00 : f32
    %60 = vector.broadcast %cst_28 : f32 to vector<16x16xf32>
    %61 = vector.broadcast %cst_29 : f32 to vector<16x16xf32>
    %62 = arith.select %59, %60, %61 : vector<16x16xi1>, vector<16x16xf32>
    %cst_30 = arith.constant dense<0.000000e+00> : vector<16x16xf32>
    %63 = tpu.matmul %62, %24, %cst_30 {dimension_numbers = #tpu.dot_dimension_numbers<[1], [0], [0], [1], [0, 0, 1, 1], [], []>} : vector<16x16xf32>, vector<16x16xf32>, vector<16x16xf32> -> vector<16x16xf32>
    %64 = arith.subf %24, %63 : vector<16x16xf32>
    %65 = math.absf %64 : vector<16x16xf32>
    %66 = tpu.iota {dimensions = array<i32: 0>} : vector<8x16xi32>
    %67 = tpu.iota {dimensions = array<i32: 1>} : vector<8x16xi32>
    %c4_i32_31 = arith.constant 4 : i32
    %c0_i32_32 = arith.constant 0 : i32
    %68 = arith.cmpi eq, %c4_i32_31, %c0_i32_32 : i32
    %c1_i32_33 = arith.constant 1 : i32
    %69 = arith.select %68, %c1_i32_33, %c4_i32_31 : i32
    %70 = vector.broadcast %69 : i32 to vector<8x16xi32>
    %71 = arith.remsi %67, %70 : vector<8x16xi32>
    %c0_i32_34 = arith.constant 0 : i32
    %72 = vector.broadcast %c0_i32_34 : i32 to vector<8x16xi32>
    %73 = arith.cmpi ne, %71, %72 : vector<8x16xi32>
    %c0_i32_35 = arith.constant 0 : i32
    %74 = vector.broadcast %c0_i32_35 : i32 to vector<8x16xi32>
    %75 = arith.cmpi slt, %71, %74 : vector<8x16xi32>
    %c0_i32_36 = arith.constant 0 : i32
    %76 = arith.cmpi slt, %69, %c0_i32_36 : i32
    %77 = vector.broadcast %76 : i1 to vector<8x16xi1>
    %78 = vector.broadcast %77 : vector<8x16xi1> to vector<8x16xi1>
    %79 = arith.xori %75, %78 : vector<8x16xi1>
    %80 = arith.andi %79, %73 : vector<8x16xi1>
    %81 = vector.broadcast %69 : i32 to vector<8x16xi32>
    %82 = arith.addi %71, %81 : vector<8x16xi32>
    %83 = arith.select %80, %82, %71 : vector<8x16xi1>, vector<8x16xi32>
    %c4_i32_37 = arith.constant 4 : i32
    %84 = vector.broadcast %c4_i32_37 : i32 to vector<8x16xi32>
    %85 = arith.cmpi slt, %66, %84 : vector<8x16xi32>
    %86 = arith.cmpi eq, %83, %66 : vector<8x16xi32>
    %87 = arith.andi %85, %86 : vector<8x16xi1>
    %cst_38 = arith.constant 2.500000e-01 : f32
    %cst_39 = arith.constant 0.000000e+00 : f32
    %88 = vector.broadcast %cst_38 : f32 to vector<8x16xf32>
    %89 = vector.broadcast %cst_39 : f32 to vector<8x16xf32>
    %90 = arith.select %87, %88, %89 : vector<8x16xi1>, vector<8x16xf32>
    %c4_i32_40 = arith.constant 4 : i32
    %91 = vector.broadcast %c4_i32_40 : i32 to vector<8x16xi32>
    %92 = arith.cmpi sge, %66, %91 : vector<8x16xi32>
    %c4_i32_41 = arith.constant 4 : i32
    %93 = vector.broadcast %c4_i32_41 : i32 to vector<8x16xi32>
    %94 = arith.subi %66, %93 : vector<8x16xi32>
    %95 = arith.cmpi eq, %83, %94 : vector<8x16xi32>
    %96 = arith.andi %92, %95 : vector<8x16xi1>
    %cst_42 = arith.constant 0.333333343 : f32
    %cst_43 = arith.constant 0.000000e+00 : f32
    %97 = vector.broadcast %cst_42 : f32 to vector<8x16xf32>
    %98 = vector.broadcast %cst_43 : f32 to vector<8x16xf32>
    %99 = arith.select %96, %97, %98 : vector<8x16xi1>, vector<8x16xf32>
    %cst_44 = arith.constant dense<0.000000e+00> : vector<8x16xf32>
    %100 = tpu.matmul %90, %24, %cst_44 {dimension_numbers = #tpu.dot_dimension_numbers<[1], [0], [0], [1], [0, 0, 1, 1], [], []>} : vector<8x16xf32>, vector<16x16xf32>, vector<8x16xf32> -> vector<8x16xf32>
    %cst_45 = arith.constant dense<0.000000e+00> : vector<8x16xf32>
    %101 = tpu.matmul %99, %65, %cst_45 {dimension_numbers = #tpu.dot_dimension_numbers<[1], [0], [0], [1], [0, 0, 1, 1], [], []>} : vector<8x16xf32>, vector<16x16xf32>, vector<8x16xf32> -> vector<8x16xf32>
    %102 = arith.addf %100, %101 : vector<8x16xf32>
    %c0_46 = arith.constant 0 : index
    %c0_47 = arith.constant 0 : index
    %103 = vector.load %arg8[%c0_46, %c0_47] : memref<8x16xf32, #tpu.memory_space<vmem>>, vector<8x16xf32>
    tpu.vector_store %arg8[%c0_46, %c0_47], %102 {strides = array<i32>} : memref<8x16xf32, #tpu.memory_space<vmem>>, vector<8x16xf32>,
    return
  }
  func.func @transform_0(%arg0: i32) -> (i32, i32) {
    %c0_i32 = arith.constant 0 : i32
    %c0_i32_0 = arith.constant 0 : i32
    return %c0_i32, %arg0 : i32, i32
  }
  func.func @transform_1(%arg0: i32) -> (i32, i32) {
    %c0_i32 = arith.constant 0 : i32
    %c0_i32_0 = arith.constant 0 : i32
    %c0_i32_1 = arith.constant 0 : i32
    return %c0_i32, %c0_i32_0 : i32, i32
  }
  func.func @transform_2(%arg0: i32) -> (i32, i32) {
    %c0_i32 = arith.constant 0 : i32
    %c0_i32_0 = arith.constant 0 : i32
    %c0_i32_1 = arith.constant 0 : i32
    return %c0_i32, %c0_i32_0 : i32, i32
  }
  func.func @transform_3(%arg0: i32) -> (i32, i32, i32) {
    %c0_i32 = arith.constant 0 : i32
    %c0_i32_0 = arith.constant 0 : i32
    %c0_i32_1 = arith.constant 0 : i32
    %c0_i32_2 = arith.constant 0 : i32
    return %c0_i32, %c0_i32_0, %c0_i32_1 : i32, i32, i32
  }
  func.func @transform_4(%arg0: i32) -> (i32, i32, i32) {
    %c0_i32 = arith.constant 0 : i32
    %c0_i32_0 = arith.constant 0 : i32
    %c0_i32_1 = arith.constant 0 : i32
    %c0_i32_2 = arith.constant 0 : i32
    return %c0_i32, %c0_i32_0, %c0_i32_1 : i32, i32, i32
  }
  func.func @transform_5(%arg0: i32) -> (i32, i32) {
    %c0_i32 = arith.constant 0 : i32
    %c0_i32_0 = arith.constant 0 : i32
    %c0_i32_1 = arith.constant 0 : i32
    return %c0_i32, %c0_i32_0 : i32, i32
  }
  func.func @transform_6(%arg0: i32) -> (i32, i32) {
    %c0_i32 = arith.constant 0 : i32
    %c0_i32_0 = arith.constant 0 : i32
    %c0_i32_1 = arith.constant 0 : i32
    return %c0_i32, %c0_i32_0 : i32, i32
  }
  func.func @transform_7(%arg0: i32) -> (i32, i32) {
    %c0_i32 = arith.constant 0 : i32
    %c0_i32_0 = arith.constant 0 : i32
    return %c0_i32, %arg0 : i32, i32
  }
}

</mosaic_0001>

<bundles_post_ra>
// kernel: tpu_custom_call.1
= control target key start
LH: loop header
LB: loop body
LE: loop exit
PB: predicated region body
PF: predicated region fallthrough
CT: control target
= control target key end

     0   :  { %vm140_vm0 = vcmask 64512   ;;  %v1349_v4 = vmov 0   ;;  %s1644_s0 = inlined_call_operand.vmem [shape: f32[8,16], index: 0, kind: input, shape index: {}]   ;;  %s1645_s1 = inlined_call_operand.vmem [shape: f32[128,8], index: 1, kind: input, shape index: {}]   ;;  %s1646_s2 = inlined_call_operand.vmem [shape: f32[128,1], index: 2, kind: input, shape index: {}]   ;;  %s1647_s3 = inlined_call_operand.vmem [shape: f32[1,128,128], index: 3, kind: input, shape index: {}]   ;;  %s1648_s4 = inlined_call_operand.vmem [shape: f32[1,128,1], index: 4, kind: input, shape index: {}]   ;;  %s1649_s5 = inlined_call_operand.vmem [shape: f32[16,128], index: 5, kind: input, shape index: {}]   ;;  %s1650_s6 = inlined_call_operand.vmem [shape: f32[16,1], index: 6, kind: input, shape index: {}]   ;;  %s1651_s7 = inlined_call_operand.hbm [shape: f32[8,16], index: 7, kind: output, shape index: {}]  }
   0x1   :  { %v27_v0 = vld [vmem:[%s1644_s0] sm:$0xff]  ;;  %v29_v2 = vld [vmem:[%s1645_s1 + $0x8] sm:$0xff]  ;;  %v30_v3 = vld [vmem:[%s1645_s1 + $0x10] sm:$0xff]  ;;  %1257 = vset.pattern.permute.xlu0 %v1349_v4  ;;  %1258 = vset.pattern.permute.xlu1 %v1349_v4 }
   0x2   :  { %v28_v1 = vld [vmem:[%s1645_s1] sm:$0xff]  ;;  %1115 = vmatprep.subr.mxu0 %v27_v0  ;;  %v31_v5 = vld [vmem:[%s1645_s1 + $0x18] sm:$0xff]  ;;  %v57_v8 = vld [vmem:[%s1646_s2 + $0x68] sm:$0xff] }
   0x3   :  { %1117 = vmatprep.mubr.msk.f32.mxu0 %vm140_vm0, %v28_v1  ;;  %1116 = vmatpush3.msra.mxu0 %v27_v0  ;;  %v32_v6 = vld [vmem:[%s1645_s1 + $0x20] sm:$0xff]  ;;  %v59_v7 = vld [vmem:[%s1646_s2 + $0x78] sm:$0xff]  ;;  %v58_v9 = vld [vmem:[%s1646_s2 + $0x70] sm:$0xff] }
   0x4   :  { %1118 = vmatmul.mubr.msk.f32.vlgmr.msra.gmra.mxu0 %vm140_vm0, %v29_v2  ;;  %137 = vperm.xlu0 %1257, %v59_v7   ;;  %v33_v10 = vld [vmem:[%s1645_s1 + $0x28] sm:$0xff]  ;;  %v56_v11 = vld [vmem:[%s1646_s2 + $0x60] sm:$0xff]  ;;  %v34_v12 = vld [vmem:[%s1645_s1 + $0x30] sm:$0xff] }
   0x5   :  { %1120 = vmatprep.mubr.msk.f32.mxu0 %vm140_vm0, %v30_v3  ;;  %127 = vperm.xlu1 %1258, %v57_v8   ;;  %v55_v13 = vld [vmem:[%s1646_s2 + $0x58] sm:$0xff]  ;;  %v54_v15 = vld [vmem:[%s1646_s2 + $0x50] sm:$0xff]  ;;  %v36_v16 = vld [vmem:[%s1645_s1 + $0x40] sm:$0xff] }
   0x6   :  { %v35_v14 = vld [vmem:[%s1645_s1 + $0x38] sm:$0xff]  ;;  %v53_v17 = vld [vmem:[%s1646_s2 + $0x48] sm:$0xff]  ;;  %v52_v19 = vld [vmem:[%s1646_s2 + $0x40] sm:$0xff] }
   0x7   :  { %v37_v18 = vld [vmem:[%s1645_s1 + $0x48] sm:$0xff]  ;;  %v38_v20 = vld [vmem:[%s1645_s1 + $0x50] sm:$0xff] }
   0x8   :  { %1121 = vmatmul.mubr.msk.f32.gmra.mxu0 %vm140_vm0, %v31_v5  ;;  %132 = vperm.xlu0 %1257, %v58_v9  }
   0x9   :  { %1123 = vmatprep.mubr.msk.f32.mxu0 %vm140_vm0, %v32_v6  ;;  %122 = vperm.xlu1 %1258, %v56_v11  }
   0xc   :  { %1124 = vmatmul.mubr.msk.f32.gmra.mxu0 %vm140_vm0, %v33_v10  ;;  %117 = vperm.xlu0 %1257, %v55_v13  }
   0xd   :  { %1126 = vmatprep.mubr.msk.f32.mxu0 %vm140_vm0, %v34_v12  ;;  %112 = vperm.xlu1 %1258, %v54_v15  }
  0x10   :  { %1127 = vmatmul.mubr.msk.f32.gmra.mxu0 %vm140_vm0, %v35_v14 }
  0x11   :  { %1129 = vmatprep.mubr.msk.f32.mxu0 %vm140_vm0, %v36_v16 }
  0x12   :  { %12 = vsyncpa [#allocation3], 0  ;;  %107 = vperm.xlu0 %1257, %v53_v17   ;;  %102 = vperm.xlu1 %1258, %v52_v19   ;;  %v51_v21 = vld [vmem:[%s1646_s2 + $0x38] sm:$0xff]  ;;  %v50_v23 = vld [vmem:[%s1646_s2 + $0x30] sm:$0xff]  ;;  %vm761_vm2 = vcmask 130048   ;;  %vm1351_vm4 = vmmov 0  }
  0x13   :  { %v39_v22 = vld [vmem:[%s1645_s1 + $0x58] sm:$0xff]  ;;  %v40_v24 = vld [vmem:[%s1645_s1 + $0x60] sm:$0xff]  ;;  %v49_v25 = vld [vmem:[%s1646_s2 + $0x28] sm:$0xff] }
  0x14   :  { %1130 = vmatmul.mubr.msk.f32.gmra.mxu0 %vm140_vm0, %v37_v18  ;;  %v41_v26 = vld [vmem:[%s1645_s1 + $0x68] sm:$0xff]  ;;  %v48_v27 = vld [vmem:[%s1646_s2 + $0x20] sm:$0xff]  ;;  %v42_v28 = vld [vmem:[%s1645_s1 + $0x70] sm:$0xff] }
  0x15   :  { %1132 = vmatprep.mubr.msk.f32.mxu0 %vm140_vm0, %v38_v20  ;;  %v47_v29 = vld [vmem:[%s1646_s2 + $0x18] sm:$0xff]  ;;  %v46_v31 = vld [vmem:[%s1646_s2 + $0x10] sm:$0xff]  ;;  %v45_v32 = vld [vmem:[%s1646_s2 + $0x8] sm:$0xff] }
  0x16   :  { %97 = vperm.xlu0 %1257, %v51_v21   ;;  %92 = vperm.xlu1 %1258, %v50_v23   ;;  %v43_v30 = vld [vmem:[%s1645_s1 + $0x78] sm:$0xff]  ;;  %v44_v33 = vld [vmem:[%s1646_s2] sm:$0xff]  ;;  %v380_v35 = vld [vmem:[%s1648_s4 + $0x70] sm:$0xff] }
  0x17   :  { %v381_v34 = vld [vmem:[%s1648_s4 + $0x78] sm:$0xff]  ;;  %v379_v36 = vld [vmem:[%s1648_s4 + $0x68] sm:$0xff]  ;;  %v378_v37 = vld [vmem:[%s1648_s4 + $0x60] sm:$0xff] }
  0x18   :  { %1133 = vmatmul.mubr.msk.f32.gmra.mxu0 %vm140_vm0, %v39_v22  ;;  %v377_v38 = vld [vmem:[%s1648_s4 + $0x58] sm:$0xff]  ;;  %v376_v39 = vld [vmem:[%s1648_s4 + $0x50] sm:$0xff]  ;;  %v375_v40 = vld [vmem:[%s1648_s4 + $0x48] sm:$0xff] }
  0x19   :  { %1135 = vmatprep.mubr.msk.f32.mxu0 %vm140_vm0, %v40_v24  ;;  %v374_v41 = vld [vmem:[%s1648_s4 + $0x40] sm:$0xff]  ;;  %v373_v42 = vld [vmem:[%s1648_s4 + $0x38] sm:$0xff]  ;;  %v372_v43 = vld [vmem:[%s1648_s4 + $0x30] sm:$0xff] }
  0x1a   :  { %87 = vperm.xlu0 %1257, %v49_v25   ;;  %82 = vperm.xlu1 %1258, %v48_v27   ;;  %v371_v44 = vld [vmem:[%s1648_s4 + $0x28] sm:$0xff]  ;;  %v370_v45 = vld [vmem:[%s1648_s4 + $0x20] sm:$0xff]  ;;  %v369_v46 = vld [vmem:[%s1648_s4 + $0x18] sm:$0xff] }
  0x1b   :  { %v368_v47 = vld [vmem:[%s1648_s4 + $0x10] sm:$0xff]  ;;  %v367_v48 = vld [vmem:[%s1648_s4 + $0x8] sm:$0xff]  ;;  %v366_v49 = vld [vmem:[%s1648_s4] sm:$0xff] }
  0x1c   :  { %1136 = vmatmul.mubr.msk.f32.gmra.mxu0 %vm140_vm0, %v41_v26  ;;  %v626_v50 = vld [vmem:[%s1650_s6 + $0x8] sm:$0xff]  ;;  %v625_v51 = vld [vmem:[%s1650_s6] sm:$0xff] }
  0x1d   :  { %1138 = vmatprep.mubr.msk.f32.mxu0 %vm140_vm0, %v42_v28  ;;  %v350_v52 = vld [vmem:[%s1647_s3] sm:$0xff] }
  0x1e   :  { %77 = vperm.xlu0 %1257, %v47_v29   ;;  %72 = vperm.xlu1 %1258, %v46_v31  }
  0x1f   :  { %1173 = vmatprep.mubr.f32.mxu1 %v350_v52 }
  0x20   :  { %1139 = vmatmul.mubr.msk.f32.gmra.mxu0 %vm140_vm0, %v43_v30 }
  0x22   :  { %67 = vperm.xlu0 %1257, %v45_v32   ;;  %62 = vperm.xlu1 %1258, %v44_v33  }
  0x26   :  { %459 = vperm.xlu0 %1257, %v381_v34   ;;  %454 = vperm.xlu1 %1258, %v380_v35  }
  0x2a   :  { %449 = vperm.xlu0 %1257, %v379_v36   ;;  %444 = vperm.xlu1 %1258, %v378_v37  }
  0x2e   :  { %439 = vperm.xlu0 %1257, %v377_v38   ;;  %434 = vperm.xlu1 %1258, %v376_v39  }
  0x32   :  { %429 = vperm.xlu0 %1257, %v375_v40   ;;  %424 = vperm.xlu1 %1258, %v374_v41  }
  0x36   :  { %419 = vperm.xlu0 %1257, %v373_v42   ;;  %414 = vperm.xlu1 %1258, %v372_v43  }
  0x3a   :  { %409 = vperm.xlu0 %1257, %v371_v44   ;;  %404 = vperm.xlu1 %1258, %v370_v45  }
  0x3e   :  { %399 = vperm.xlu0 %1257, %v369_v46   ;;  %394 = vperm.xlu1 %1258, %v368_v47  }
  0x42   :  { %389 = vperm.xlu0 %1257, %v367_v48   ;;  %384 = vperm.xlu1 %1258, %v366_v49  }
  0x46   :  { %634 = vperm.xlu0 %1257, %v626_v50   ;;  %629 = vperm.xlu1 %1258, %v625_v51  }
  0x7f   :  { %v138_v59 = vpop.permute.xlu0 %137 }
  0x80   :  { %v128_v61 = vpop.permute.xlu1 %127 }
  0x83   :  { %v133_v0 = vpop.permute.xlu0 %132 }
  0x84   :  { %v123_v2 = vpop.permute.xlu1 %122 }
  0x87   :  { %v118_v5 = vpop.permute.xlu0 %117 }
  0x88   :  { %v113_v7 = vpop.permute.xlu1 %112 }
  0x8d   :  { %v108_v11 = vpop.permute.xlu0 %107  ;;  %v103_v15 = vpop.permute.xlu1 %102 }
  0x91   :  { %v98_v18 = vpop.permute.xlu0 %97  ;;  %v93_v20 = vpop.permute.xlu1 %92 }
  0x95   :  { %v88_v23 = vpop.permute.xlu0 %87  ;;  %v83_v26 = vpop.permute.xlu1 %82 }
  0x99   :  { %v78_v31 = vpop.permute.xlu0 %77  ;;  %v73_v34 = vpop.permute.xlu1 %72 }
  0x9d   :  { %v68_v39 = vpop.permute.xlu0 %67  ;;  %v63_v42 = vpop.permute.xlu1 %62 }
  0xc4   :  { %v1565_v53 = vpop.f32.mrf.mxu0 }
  0xc5   :  { %v261_v40 = vadd.f32 %v1565_v53, %v68_v39  ;;  %v351_v53 = vld [vmem:[%s1647_s3 + $0x8] sm:$0xff] }
  0xc6   :  { %v1567_v54 = vpop.f32.mrf.mxu0 }
  0xc7   :  { %v256_v43 = vadd.f32 %v1567_v54, %v63_v42  ;;  %v352_v54 = vld [vmem:[%s1647_s3 + $0x10] sm:$0xff] }
  0xc8   :  { %v1122_v55 = vpop.f32.mrf.mxu0 }
  0xc9   :  { %v271_v35 = vadd.f32 %v1122_v55, %v78_v31  ;;  %v353_v55 = vld [vmem:[%s1647_s3 + $0x18] sm:$0xff] }
  0xca   :  { %v1569_v56 = vpop.f32.mrf.mxu0 }
  0xcb   :  { %v266_v37 = vadd.f32 %v1569_v56, %v73_v34  ;;  %v354_v56 = vld [vmem:[%s1647_s3 + $0x20] sm:$0xff] }
  0xcc   :  { %v1125_v57 = vpop.f32.mrf.mxu0 }
  0xcd   :  { %v281_v29 = vadd.f32 %v1125_v57, %v88_v23  ;;  %v355_v57 = vld [vmem:[%s1647_s3 + $0x28] sm:$0xff] }
  0xce   :  { %v275_v58 = vpop.f32.mrf.mxu0 }
  0xcf   :  { %v276_v32 = vadd.f32 %v275_v58, %v83_v26  ;;  %v356_v58 = vld [vmem:[%s1647_s3 + $0x30] sm:$0xff] }
  0xd0   :  { %v1128_v60 = vpop.f32.mrf.mxu0 }
  0xd1   :  { %v291_v24 = vadd.f32 %v1128_v60, %v98_v18  ;;  %v358_v60 = vld [vmem:[%s1647_s3 + $0x40] sm:$0xff] }
  0xd2   :  { %v285_v62 = vpop.f32.mrf.mxu0 }
  0xd3   :  { %v286_v27 = vadd.f32 %v285_v62, %v93_v20  ;;  %v360_v62 = vld [vmem:[%s1647_s3 + $0x50] sm:$0xff] }
  0xd4   :  { %v1131_v63 = vpop.f32.mrf.mxu0 }
  0xd5   :  { %v301_v21 = vadd.f32 %v1131_v63, %v108_v11  ;;  %v361_v63 = vld [vmem:[%s1647_s3 + $0x58] sm:$0xff]  ;;  %v460_v11 = vpop.permute.xlu0 %459 }
  0xd6   :  { %v295_v1 = vpop.f32.mrf.mxu0 }
  0xd7   :  { %v296_v22 = vadd.f32 %v295_v1, %v103_v15  ;;  %v363_v1 = vld [vmem:[%s1647_s3 + $0x68] sm:$0xff] }
  0xd8   :  { %v1134_v3 = vpop.f32.mrf.mxu0 }
  0xd9   :  { %v311_v17 = vadd.f32 %v1134_v3, %v118_v5  ;;  %v365_v3 = vld [vmem:[%s1647_s3 + $0x78] sm:$0xff] }
  0xda   :  { %v305_v4 = vpop.f32.mrf.mxu0 }
  0xdb   :  { %v306_v19 = vadd.f32 %v305_v4, %v113_v7  ;;  %v623_v4 = vld [vmem:[%s1649_s5] sm:$0xff] }
  0xdc   :  { %v1137_v6 = vpop.f32.mrf.mxu0  ;;  %1229 = vmatprep.mubr.f32.mxu0 %v623_v4 }
  0xdd   :  { %v321_v13 = vadd.f32 %v1137_v6, %v128_v61  ;;  %v359_v61 = vld [vmem:[%s1647_s3 + $0x48] sm:$0xff] }
  0xde   :  { %v315_v8 = vpop.f32.mrf.mxu0 }
  0xdf   :  { %v316_v16 = vadd.f32 %v315_v8, %v123_v2  ;;  %v364_v2 = vld [vmem:[%s1647_s3 + $0x70] sm:$0xff] }
  0xe0   :  { %v1140_v9 = vpop.f32.mrf.mxu0 }
  0xe1   :  { %v331_v10 = vadd.f32 %v1140_v9, %v138_v59  ;;  %v357_v59 = vld [vmem:[%s1647_s3 + $0x38] sm:$0xff] }
  0xe2   :  { %v325_v12 = vpop.f32.mrf.mxu0 }
  0xe3   :  { %1259 = vtanh.f32 %v331_v10  ;;  %v326_v14 = vadd.f32 %v325_v12, %v133_v0  ;;  %v362_v0 = vld [vmem:[%s1647_s3 + $0x60] sm:$0xff] }
  0xe5   :  { %1261 = vtanh.f32 %v326_v14 }
  0xe6   :  { %1263 = vtanh.f32 %v321_v13  ;;  %v455_v13 = vpop.permute.xlu1 %454 }
  0xe7   :  { %1265 = vtanh.f32 %v316_v16  ;;  %v450_v16 = vpop.permute.xlu0 %449 }
  0xe8   :  { %1267 = vtanh.f32 %v311_v17 }
  0xe9   :  { %1269 = vtanh.f32 %v306_v19 }
  0xea   :  { %1271 = vtanh.f32 %v301_v21  ;;  %v445_v18 = vpop.permute.xlu1 %444 }
  0xeb   :  { %1273 = vtanh.f32 %v296_v22  ;;  %v440_v21 = vpop.permute.xlu0 %439 }
  0xec   :  { %1275 = vtanh.f32 %v291_v24 }
  0xed   :  { %1277 = vtanh.f32 %v286_v27 }
  0xee   :  { %1279 = vtanh.f32 %v281_v29  ;;  %v435_v23 = vpop.permute.xlu1 %434 }
  0xef   :  { %1281 = vtanh.f32 %v276_v32  ;;  %v430_v27 = vpop.permute.xlu0 %429 }
  0xf0   :  { %v1260_v25 = vpop.eup %1259  ;;  %1283 = vtanh.f32 %v271_v35 }
  0xf1   :  { %1141 = vmatprep.subr.mxu1 %v1260_v25  ;;  %1285 = vtanh.f32 %v266_v37 }
  0xf2   :  { %v1262_v28 = vpop.eup %1261  ;;  %1142 = vmatpush3.msra.mxu1 %v1260_v25  ;;  %1287 = vtanh.f32 %v261_v40  ;;  %v425_v31 = vpop.permute.xlu1 %424 }
  0xf3   :  { %1143 = vmatprep.subr.mxu1 %v1262_v28  ;;  %v1264_v30 = vpop.eup %1263  ;;  %1289 = vtanh.f32 %v256_v43  ;;  %v420_v34 = vpop.permute.xlu0 %419 }
  0xf4   :  { %1144 = vmatpush3.msra.mxu1 %v1262_v28  ;;  %v1266_v33 = vpop.eup %1265 }
  0xf5   :  { %1145 = vmatprep.subr.mxu1 %v1264_v30  ;;  %v1268_v36 = vpop.eup %1267 }
  0xf6   :  { %1146 = vmatpush3.msra.mxu1 %v1264_v30  ;;  %v1270_v38 = vpop.eup %1269 }
  0xf7   :  { %1147 = vmatprep.subr.mxu1 %v1266_v33  ;;  %v1272_v41 = vpop.eup %1271  ;;  %v410_v39 = vpop.permute.xlu0 %409 }
  0xf8   :  { %1148 = vmatpush3.msra.mxu1 %v1266_v33  ;;  %v1274_v44 = vpop.eup %1273 }
  0xf9   :  { %1149 = vmatprep.subr.mxu1 %v1268_v36  ;;  %v1276_v45 = vpop.eup %1275 }
  0xfa   :  { %1150 = vmatpush3.msra.mxu1 %v1268_v36  ;;  %v1278_v46 = vpop.eup %1277  ;;  %v415_v36 = vpop.permute.xlu1 %414 }
  0xfb   :  { %1151 = vmatprep.subr.mxu1 %v1270_v38  ;;  %v1280_v47 = vpop.eup %1279 }
  0xfc   :  { %1152 = vmatpush3.msra.mxu1 %v1270_v38  ;;  %v1282_v48 = vpop.eup %1281 }
  0xfd   :  { %1153 = vmatprep.subr.mxu1 %v1272_v41  ;;  %v1284_v49 = vpop.eup %1283 }
  0xfe   :  { %1154 = vmatpush3.msra.mxu1 %v1272_v41  ;;  %v1286_v50 = vpop.eup %1285  ;;  %v405_v42 = vpop.permute.xlu1 %404 }
  0xff   :  { %1155 = vmatprep.subr.mxu1 %v1274_v44  ;;  %v1288_v51 = vpop.eup %1287 }
 0x100   :  { %1156 = vmatpush3.msra.mxu1 %v1274_v44  ;;  %v1290_v52 = vpop.eup %1289 }
 0x101   :  { %1157 = vmatprep.subr.mxu1 %v1276_v45 }
 0x102   :  { %1158 = vmatpush3.msra.mxu1 %v1276_v45 }
 0x103   :  { %1159 = vmatprep.subr.mxu1 %v1278_v46 }
 0x104   :  { %1160 = vmatpush3.msra.mxu1 %v1278_v46 }
 0x105   :  { %1161 = vmatprep.subr.mxu1 %v1280_v47 }
 0x106   :  { %1162 = vmatpush3.msra.mxu1 %v1280_v47  ;;  %v400_v47 = vpop.permute.xlu0 %399 }
 0x107   :  { %1163 = vmatprep.subr.mxu1 %v1282_v48 }
 0x108   :  { %1164 = vmatpush3.msra.mxu1 %v1282_v48 }
 0x109   :  { %1165 = vmatprep.subr.mxu1 %v1284_v49 }
 0x10a   :  { %1166 = vmatpush3.msra.mxu1 %v1284_v49 }
 0x10b   :  { %1167 = vmatprep.subr.mxu1 %v1286_v50 }
 0x10c   :  { %1168 = vmatpush3.msra.mxu1 %v1286_v50  ;;  %v395_v50 = vpop.permute.xlu1 %394 }
 0x10d   :  { %1169 = vmatprep.subr.mxu1 %v1288_v51 }
 0x10e   :  { %1170 = vmatpush3.msra.mxu1 %v1288_v51 }
 0x10f   :  { %1171 = vmatprep.subr.mxu1 %v1290_v52 }
 0x110   :  { %1172 = vmatpush3.msra.mxu1 %v1290_v52 }
 0x111   :  { %1174 = vmatmul.mubr.f32.vlgmr.msra.gmra.mxu1 %v351_v53 }
 0x112   :  { %1176 = vmatprep.mubr.f32.mxu1 %v352_v54 }
 0x115   :  { %1177 = vmatmul.mubr.f32.gmra.mxu1 %v353_v55  ;;  %v390_v55 = vpop.permute.xlu0 %389 }
 0x116   :  { %1179 = vmatprep.mubr.f32.mxu1 %v354_v56 }
 0x119   :  { %1180 = vmatmul.mubr.f32.gmra.mxu1 %v355_v57 }
 0x11a   :  { %1182 = vmatprep.mubr.f32.mxu1 %v356_v58  ;;  %v385_v58 = vpop.permute.xlu1 %384 }
 0x11d   :  { %1183 = vmatmul.mubr.f32.gmra.mxu1 %v357_v59 }
 0x11e   :  { %1185 = vmatprep.mubr.f32.mxu1 %v358_v60 }
 0x121   :  { %1186 = vmatmul.mubr.f32.gmra.mxu1 %v359_v61 }
 0x122   :  { %1188 = vmatprep.mubr.f32.mxu1 %v360_v62 }
 0x125   :  { %1189 = vmatmul.mubr.f32.gmra.mxu1 %v361_v63 }
 0x126   :  { %1191 = vmatprep.mubr.f32.mxu1 %v362_v0 }
 0x129   :  { %1192 = vmatmul.mubr.f32.gmra.mxu1 %v363_v1 }
 0x12a   :  { %1194 = vmatprep.mubr.f32.mxu1 %v364_v2 }
 0x12d   :  { %1195 = vmatmul.mubr.f32.gmra.mxu1 %v365_v3 }
 0x1d1   :  { %v1622_v5 = vpop.f32.mrf.mxu1 }
 0x1d2   :  { %v534_v56 = vadd.f32 %v1622_v5, %v390_v55  ;;  %v624_v5 = vld [vmem:[%s1649_s5 + $0x8] sm:$0xff]  ;;  %s1352_s5 = smov [#allocation2]  }
 0x1d3   :  { %v1624_v6 = vpop.f32.mrf.mxu1  ;;  %s1009_s8 = sshll.u32 %s1352_s5, 4  ;;  %s1010_s8 = int_to_ptr.vmem [resolvable:$true] %s1009_s8 }
 0x1d4   :  { %v529_v59 = vadd.f32 %v1624_v6, %v385_v58  ;;  %v716_v6 = vlaneseq  ;;  %s1327_s0 = scalar_lea.vmem %s1010_s8, 128  ;;  %p1332_p1 = scmp.lt.s32.totalorder %s1010_s8, %s1010_s8 }
 0x1d5   :  { %v1178_v7 = vpop.f32.mrf.mxu1  ;;  %p1328_p0 = scmp.ne.s32.totalorder %s1010_s8, %s1327_s0  ;;  %p1333_p2 = scmp.lt.s32.totalorder %s1327_s0, %s1327_s0 }
 0x1d6   :  { %v544_v51 = vadd.f32 %v1178_v7, %v400_v47  ;;  %v717_v7 = vshrl.u32 %v716_v6, 7 }
 0x1d7   :  { %v1626_v8 = vpop.f32.mrf.mxu1  ;;  %p1334_p3 = por %p1333_p2, %p1332_p1 }
 0x1d8   :  { %v539_v53 = vadd.f32 %v1626_v8, %v395_v50  ;;  %v744_v8 = vand.u32 127, %v716_v6  ;;  %vm851_vm5 = vcmp.ge.s32.totalorder %v717_v7, 4  ;;  %vm847_vm8 = vcmp.lt.s32.totalorder %v717_v7, 4 }
 0x1d9   :  { %v1181_v9 = vpop.f32.mrf.mxu1  ;;  %p1335_p4 = pnand %p1334_p3, %p1328_p0 }
 0x1da   :  { %v554_v45 = vadd.f32 %v1181_v9, %v410_v39  ;;  %v723_v9 = vand.u32 3, %v717_v7 }
 0x1db   :  { %v548_v10 = vpop.f32.mrf.mxu1 }
 0x1dc   :  { %v549_v48 = vadd.f32 %v548_v10, %v405_v42  ;;  %v749_v10 = vand.u32 3, %v744_v8 }
 0x1dd   :  { %v1184_v12 = vpop.f32.mrf.mxu1 }
 0x1de   :  { %v564_v40 = vadd.f32 %v1184_v12, %v420_v34  ;;  %vm757_vm1 = vcmp.eq.s32.totalorder %v723_v9, %v749_v10  ;;  %vm848_vm9 = vcmp.eq.s32.totalorder %v749_v10, %v717_v7 }
 0x1df   :  { %v558_v14 = vpop.f32.mrf.mxu1  ;;  %vm849_vm10 = vmand %vm847_vm8, %vm848_vm9 }
 0x1e0   :  { %v559_v43 = vadd.f32 %v558_v14, %v415_v36 }
 0x1e1   :  { %v1187_v15 = vpop.f32.mrf.mxu1 }
 0x1e2   :  { %v574_v37 = vadd.f32 %v1187_v15, %v430_v27 }
 0x1e3   :  { %v568_v17 = vpop.f32.mrf.mxu1 }
 0x1e4   :  { %v569_v38 = vadd.f32 %v568_v17, %v425_v31 }
 0x1e5   :  { %v1190_v19 = vpop.f32.mrf.mxu1 }
 0x1e6   :  { %v584_v33 = vadd.f32 %v1190_v19, %v440_v21  ;;  %v718_v19 = vadd.s32 8, %v717_v7 }
 0x1e7   :  { %v578_v20 = vpop.f32.mrf.mxu1 }
 0x1e8   :  { %v579_v35 = vadd.f32 %v578_v20, %v435_v23  ;;  %v730_v20 = vand.u32 3, %v718_v19 }
 0x1e9   :  { %v1193_v22 = vpop.f32.mrf.mxu1 }
 0x1ea   :  { %v594_v29 = vadd.f32 %v1193_v22, %v450_v16  ;;  %v630_v16 = vpop.permute.xlu1 %629  ;;  %vm758_vm3 = vcmp.eq.s32.totalorder %v730_v20, %v749_v10 }
 0x1eb   :  { %v588_v24 = vpop.f32.mrf.mxu1 }
 0x1ec   :  { %v589_v32 = vadd.f32 %v588_v24, %v445_v18  ;;  %v1035_v24 = vadd.s32 4294967292, %v717_v7 }
 0x1ed   :  { %v1196_v25 = vpop.f32.mrf.mxu1 }
 0x1ee   :  { %v604_v26 = vadd.f32 %v1196_v25, %v460_v11  ;;  %v1350_v11 = vmov 0.0   ;;  %vm853_vm6 = vcmp.eq.s32.totalorder %v749_v10, %v1035_v24 }
 0x1ef   :  { %v598_v28 = vpop.f32.mrf.mxu1  ;;  %v759_v12 = vsel %vm757_vm1, 0.25, %v1350_v11  ;;  %v760_v23 = vsel %vm758_vm3, 0.25, %v1350_v11  ;;  %vm854_vm7 = vmand %vm851_vm5, %vm853_vm6 }
 0x1f0   :  { %1291 = vtanh.f32 %v604_v26  ;;  %v599_v30 = vadd.f32 %v598_v28, %v455_v13  ;;  %v635_v13 = vpop.permute.xlu0 %634  ;;  %v855_v31 = vsel %vm854_vm7, 0.33333334, %v1350_v11 }
 0x1f2   :  { %1293 = vtanh.f32 %v599_v30 }
 0x1f3   :  { %1295 = vtanh.f32 %v594_v29 }
 0x1f4   :  { %1297 = vtanh.f32 %v589_v32  ;;  %v850_v32 = vsel %vm849_vm10, 0.25, %v1350_v11 }
 0x1f5   :  { %1299 = vtanh.f32 %v584_v33 }
 0x1f6   :  { %1301 = vtanh.f32 %v579_v35 }
 0x1f7   :  { %1303 = vtanh.f32 %v574_v37 }
 0x1f8   :  { %1305 = vtanh.f32 %v569_v38 }
 0x1f9   :  { %1307 = vtanh.f32 %v564_v40 }
 0x1fa   :  { %1309 = vtanh.f32 %v559_v43 }
 0x1fb   :  { %1311 = vtanh.f32 %v554_v45 }
 0x1fc   :  { %1313 = vtanh.f32 %v549_v48 }
 0x1fd   :  { %v1292_v41 = vpop.eup %1291  ;;  %1315 = vtanh.f32 %v544_v51 }
 0x1fe   :  { %1197 = vmatprep.subr.mxu0 %v1292_v41  ;;  %1317 = vtanh.f32 %v539_v53 }
 0x1ff   :  { %v1294_v44 = vpop.eup %1293  ;;  %1198 = vmatpush3.msra.mxu0 %v1292_v41  ;;  %1319 = vtanh.f32 %v534_v56 }
 0x200   :  { %1199 = vmatprep.subr.mxu0 %v1294_v44  ;;  %v1296_v46 = vpop.eup %1295  ;;  %1321 = vtanh.f32 %v529_v59 }
 0x201   :  { %1200 = vmatpush3.msra.mxu0 %v1294_v44  ;;  %v1298_v49 = vpop.eup %1297 }
 0x202   :  { %1201 = vmatprep.subr.mxu0 %v1296_v46  ;;  %v1300_v52 = vpop.eup %1299 }
 0x203   :  { %1202 = vmatpush3.msra.mxu0 %v1296_v46  ;;  %v1302_v54 = vpop.eup %1301 }
 0x204   :  { %1203 = vmatprep.subr.mxu0 %v1298_v49  ;;  %v1304_v57 = vpop.eup %1303 }
 0x205   :  { %1204 = vmatpush3.msra.mxu0 %v1298_v49  ;;  %v1306_v60 = vpop.eup %1305 }
 0x206   :  { %1205 = vmatprep.subr.mxu0 %v1300_v52  ;;  %v1308_v61 = vpop.eup %1307 }
 0x207   :  { %1206 = vmatpush3.msra.mxu0 %v1300_v52  ;;  %v1310_v62 = vpop.eup %1309 }
 0x208   :  { %1207 = vmatprep.subr.mxu0 %v1302_v54  ;;  %v1312_v63 = vpop.eup %1311 }
 0x209   :  { %1208 = vmatpush3.msra.mxu0 %v1302_v54  ;;  %v1314_v0 = vpop.eup %1313 }
 0x20a   :  { %1209 = vmatprep.subr.mxu0 %v1304_v57  ;;  %v1316_v1 = vpop.eup %1315 }
 0x20b   :  { %1210 = vmatpush3.msra.mxu0 %v1304_v57  ;;  %v1318_v2 = vpop.eup %1317 }
 0x20c   :  { %1211 = vmatprep.subr.mxu0 %v1306_v60  ;;  %v1320_v3 = vpop.eup %1319 }
 0x20d   :  { %1212 = vmatpush3.msra.mxu0 %v1306_v60  ;;  %v1322_v4 = vpop.eup %1321 }
 0x20e   :  { %1213 = vmatprep.subr.mxu0 %v1308_v61 }
 0x20f   :  { %1214 = vmatpush3.msra.mxu0 %v1308_v61 }
 0x210   :  { %1215 = vmatprep.subr.mxu0 %v1310_v62 }
 0x211   :  { %1216 = vmatpush3.msra.mxu0 %v1310_v62 }
 0x212   :  { %1217 = vmatprep.subr.mxu0 %v1312_v63 }
 0x213   :  { %1218 = vmatpush3.msra.mxu0 %v1312_v63 }
 0x214   :  { %1219 = vmatprep.subr.mxu0 %v1314_v0 }
 0x215   :  { %1220 = vmatpush3.msra.mxu0 %v1314_v0 }
 0x216   :  { %1221 = vmatprep.subr.mxu0 %v1316_v1 }
 0x217   :  { %1222 = vmatpush3.msra.mxu0 %v1316_v1 }
 0x218   :  { %1223 = vmatprep.subr.mxu0 %v1318_v2 }
 0x219   :  { %1224 = vmatpush3.msra.mxu0 %v1318_v2 }
 0x21a   :  { %1225 = vmatprep.subr.mxu0 %v1320_v3 }
 0x21b   :  { %1226 = vmatpush3.msra.mxu0 %v1320_v3 }
 0x21c   :  { %1227 = vmatprep.subr.mxu0 %v1322_v4 }
 0x21d   :  { %1228 = vmatpush3.msra.mxu0 %v1322_v4 }
 0x21e   :  { %1230 = vmatmul.mubr.f32.vlgmr.msra.gmra.mxu0 %v624_v5 }
 0x21f   :  { %1236 = vmatprep.mubr.msk.f32.mxu0 %vm761_vm2, %v759_v12 }
 0x2de   :  { %v1231_v14 = vpop.f32.mrf.mxu0 }
 0x2df   :  { %v709_v15 = vadd.f32 %v1231_v14, %v635_v13 }
 0x2e0   :  { %v703_v17 = vpop.f32.mrf.mxu0 }
 0x2e1   :  { %1323 = vtanh.f32 %v709_v15  ;;  %v704_v18 = vadd.f32 %v703_v17, %v630_v16 }
 0x2e3   :  { %1325 = vtanh.f32 %v704_v18 }
 0x2ee   :  { %v1324_v21 = vpop.eup %1323 }
 0x2ef   :  { %1232 = vmatprep.subr.mxu0 %v1324_v21 }
 0x2f0   :  { %v1326_v22 = vpop.eup %1325  ;;  %1233 = vmatpush3.msra.mxu0 %v1324_v21 }
 0x2f1   :  { %1234 = vmatprep.subr.mxu0 %v1326_v22 }
 0x2f2   :  { %1235 = vmatpush3.msra.mxu0 %v1326_v22 }
 0x2f3   :  { %1237 = vmatmul.mubr.msk.f32.vlgmr.msra.gmra.mxu0 %vm761_vm2, %v760_v23  ;;  %1239 = vmatprep.subr.mxu0 %v1350_v11 }
 0x2f4   :  { %1243 = vmatprep.mubr.msk.f32.mxu0 %vm1351_vm4, %v1350_v11 }
 0x3b3   :  { %v1238_v25 = vpop.f32.mrf.mxu0 }
 0x3b4   :  { %v844_v26 = vsub.f32 %v1324_v21, %v1238_v25 }
 0x3b5   :  { %v834_v27 = vpop.f32.mrf.mxu0 }
 0x3b6   :  { %v846_v28 = vand.u32 2147483647, %v844_v26  ;;  %v843_v29 = vsub.f32 %v1326_v22, %v834_v27 }
 0x3b8   :  { %v845_v30 = vand.u32 2147483647, %v843_v29  ;;  %1240 = vmatpush3.msra.mxu0 %v846_v28 }
 0x3b9   :  { %1241 = vmatprep.subr.mxu0 %v1350_v11 }
 0x3ba   :  { %1242 = vmatpush3.msra.mxu0 %v845_v30 }
 0x3bb   :  { %1244 = vmatmul.mubr.msk.f32.vlgmr.msra.gmra.mxu0 %vm761_vm2, %v855_v31  ;;  %1246 = vmatprep.subr.mxu0 %v1350_v11 }
 0x3bc   :  { %1247 = vmatpush3.msra.mxu0 %v1324_v21  ;;  %1250 = vmatprep.mubr.msk.f32.mxu0 %vm1351_vm4, %v1350_v11 }
 0x3bd   :  { %1248 = vmatprep.subr.mxu0 %v1350_v11 }
 0x3be   :  { %1249 = vmatpush3.msra.mxu0 %v1326_v22 }
 0x3bf   :  { %1251 = vmatmul.mubr.msk.f32.vlgmr.msra.gmra.mxu0 %vm761_vm2, %v850_v32 }
 0x47b   :  { %v925_v33 = vpop.f32.mrf.mxu0 }
 0x47d   :  { %v1245_v34 = vpop.f32.mrf.mxu0 }
 0x47f   :  { %v998_v35 = vpop.f32.mrf.mxu0 }
 0x480   :  { %v999_v36 = vadd.f32 %v998_v35, %v925_v33 }
 0x481   :  { %v1252_v37 = vpop.f32.mrf.mxu0 }
 0x482   :  { %1002 = vst.msk [vmem:[#allocation2] sm:$0xff] %vm761_vm2, %v999_v36 }
 0x483   :  { %1338 = shalt.err (!%p1335_p4)
}
 0x484   :  { %1012 = dma.vmem_to_hbm [thread:$0]  %s1010_s8, 128, %s1651_s7, [#allocation3]  }
 0x485   :  { %1347 = dma.done.wait [#allocation3], 128  }
 0x486   :  { %1348 = vsyncadd [#allocation3], 4294967168 }
 0x487   :  { %1016 = vsyncpa [#allocation3], 1 }

</bundles_post_ra>
